<compile_context>
chip_gen: v7x
topology: tpu7x:2x2x1
jax: 0.10.0
libtpu: 0.0.40
codegen_flags: <defaults>
</compile_context>

<pallas_src>
import jax
import jax.numpy as jnp
import numpy as np
from jax import lax
from jax.experimental import pallas as pl
from jax.experimental.pallas import tpu as pltpu


def _bilinear_kernel(x_ref, w_ref, y_ref, o_ref, xw_ref):
    # x_ref: (1, tm, D1)   w_ref: (D1, D2)   y_ref: (1, tn, D2)
    # o_ref: (1, tm, tn)   xw_ref: (tm, D2) scratch in the matmul dtype.
    j = pl.program_id(2)

    # Compute the shared X @ W once per (b, i) tile.  Native-dtype (bf16)
    # operands, f32 accumulation on the MXU; cast once at the scratch write.
    @pl.when(j == 0)
    def _():
        xw = jnp.dot(x_ref[0], w_ref[...], preferred_element_type=jnp.float32)
        xw_ref[...] = xw.astype(xw_ref.dtype)

    # (tm, D2) x (tn, D2) contracted over D2 -> (tm, tn).  NT dot_general:
    # no explicit transpose of the y tile feeds the MXU.
    out = lax.dot_general(
        xw_ref[...],
        y_ref[0],
        dimension_numbers=(((1,), (1,)), ((), ())),
        preferred_element_type=jnp.float32,
    )
    o_ref[0] = out.astype(o_ref.dtype)


def _round_up(x, m):
    return ((x + m - 1) // m) * m


def bilinear_matrix_attention(matrix_1, matrix_2, weight, *,
                              tm_target=512, tn_target=512,
                              use_bf16_matmul=True):
    """X W Y^T per batch. matrix_1: [B,R1,D1], matrix_2: [B,R2,D2], weight: [D1,D2].

    tm_target/tn_target: row-tile targets.  512/512 is a good default for
    v5e/v7x; v6e (918 TF/s vs ~1.35 TB/s) benefits from tm_target ~768-1024.
    """
    B, R1, D1 = matrix_1.shape
    B2, R2, D2 = matrix_2.shape
    assert B == B2 and weight.shape == (D1, D2)

    out_dtype = matrix_1.dtype
    mm_dtype = jnp.bfloat16 if use_bf16_matmul else matrix_1.dtype
    x = matrix_1.astype(mm_dtype)
    y = matrix_2.astype(mm_dtype)
    w = weight.astype(mm_dtype)

    # Row tiles: tm sublane-aligned (8); tn lane-aligned (128) so every output
    # store is lane-dense.  No HBM padding of the inputs (cdiv grid + edge
    # overhang); only the output is tile-padded and sliced at the end.
    tm = min(tm_target, _round_up(R1, 8))
    tn = min(tn_target, _round_up(R2, 128))

    n_i = pl.cdiv(R1, tm)
    # Megacore (v7x: 2 TensorCores): keep >= 2 parallel (b, i) iterations
    # when the problem allows it.
    if B * n_i < 2 and R1 >= 16:
        tm = _round_up(pl.cdiv(R1, 2), 8)
        n_i = pl.cdiv(R1, tm)
    n_j = pl.cdiv(R2, tn)
    r1p, r2p = n_i * tm, n_j * tn

    grid = (B, n_i, n_j)

    mm_item = jnp.dtype(mm_dtype).itemsize
    out_item = jnp.dtype(out_dtype).itemsize

    # Double-buffered x/y/out tiles + (conservatively double-buffered) W +
    # the xw scratch.  TODO(synk): single-buffer W (constant index_map) via
    # pipeline_mode=pl.Buffered(1) and K-tile W over D1 when W itself is
    # >~8-16 MiB (matters on v7x's 64 MiB VMEM).
    vmem_est = (2 * tm * D1 * mm_item
                + 2 * tn * D2 * mm_item
                + 2 * D1 * D2 * mm_item
                + 2 * tm * tn * out_item
                + tm * D2 * mm_item)
    vmem_limit = int(min(100 * 2**20, max(32 * 2**20, 2 * vmem_est)))

    # HBM traffic: X and W are fetched once (their block indices don't change
    # across j / at all), Y is re-streamed once per i-tile, output written once.
    cost = pl.CostEstimate(
        flops=2 * B * r1p * D1 * D2 + 2 * B * r1p * r2p * D2,
        transcendentals=0,
        bytes_accessed=(x.size * mm_item
                        + n_i * y.size * mm_item
                        + w.size * mm_item
                        + B * r1p * r2p * out_item),
    )

    out = pl.pallas_call(
        _bilinear_kernel,
        out_shape=jax.ShapeDtypeStruct((B, r1p, r2p), out_dtype),
        grid_spec=pltpu.PrefetchScalarGridSpec(
            num_scalar_prefetch=0,
            grid=grid,
            in_specs=[
                pl.BlockSpec((1, tm, D1), lambda b, i, j: (b, i, 0)),
                pl.BlockSpec((D1, D2), lambda b, i, j: (0, 0)),
                pl.BlockSpec((1, tn, D2), lambda b, i, j: (b, j, 0)),
            ],
            out_specs=pl.BlockSpec((1, tm, tn), lambda b, i, j: (b, i, j)),
            scratch_shapes=[pltpu.VMEM((tm, D2), mm_dtype)],
        ),
        compiler_params=pltpu.CompilerParams(
            dimension_semantics=("parallel", "parallel", "arbitrary"),
            vmem_limit_bytes=vmem_limit),
        cost_estimate=cost,
    )(x, w, y)

    # TODO(synk): for tiny R1/R2 (tm of a few rows), pack multiple batches per
    # grid step (merge B into the row dim of the X@W stage) to restore MXU
    # occupancy; kept bb=1 here for simplicity/robustness.
    if r1p != R1 or r2p != R2:
        out = out[:, :R1, :R2]
    return out


def xavier_uniform(key, shape, dtype=jnp.float32):
    fan_in, fan_out = shape[-2], shape[-1]
    limit = float(np.sqrt(6.0 / (fan_in + fan_out)))
    return jax.random.uniform(key, shape, dtype, minval=-limit, maxval=limit)


if __name__ == "__main__":
    # Small shapes consistent with the module's forward.
    B, R1, R2 = 2, 8, 8
    D1, D2 = 32, 32

    key = jax.random.PRNGKey(0)
    k1, k2, k3 = jax.random.split(key, 3)

    matrix_1 = jax.random.normal(k1, (B, R1, D1), dtype=jnp.float32)
    matrix_2 = jax.random.normal(k2, (B, R2, D2), dtype=jnp.float32)
    # Deterministic parameter init (xavier_uniform_; bias=0 is unused in forward).
    weight = xavier_uniform(k3, (D1, D2))

    out = bilinear_matrix_attention(matrix_1, matrix_2, weight)
    out = jax.block_until_ready(out)
    assert out.shape == (B, R1, R2)

    # Pure-JAX reference mimicking the kernel's numerics: bf16 matmul operands,
    # f32 accumulation, bf16 intermediate (X@W) -- same as the kernel.
    m1 = matrix_1.astype(jnp.bfloat16).astype(jnp.float32)
    m2 = matrix_2.astype(jnp.bfloat16).astype(jnp.float32)
    wb = weight.astype(jnp.bfloat16).astype(jnp.float32)
    xw = jnp.einsum("brd,de->bre", m1, wb, precision=jax.lax.Precision.HIGHEST)
    xw = xw.astype(jnp.bfloat16).astype(jnp.float32)
    ref = jnp.einsum("bre,bse->brs", xw, m2, precision=jax.lax.Precision.HIGHEST)

    max_err = float(jnp.max(jnp.abs(out - ref)))
    assert jnp.allclose(out, ref, atol=5e-3, rtol=5e-3), max_err

    print("KERNEL_OK")
</pallas_src>

<mosaic_0001>
module attributes {stable_mosaic.version = 11 : i64} {
  func.func @_bilinear_kernel(%arg0: i32, %arg1: i32, %arg2: i32, %arg3: memref<1x8x32xbf16, #tpu.memory_space<vmem>>, %arg4: memref<32x32xbf16, #tpu.memory_space<vmem>>, %arg5: memref<1x128x32xbf16, #tpu.memory_space<vmem>>, %arg6: memref<1x8x128xf32, #tpu.memory_space<vmem>>, %arg7: memref<8x32xbf16, #tpu.memory_space<vmem>>) attributes {dimension_semantics = [#tpu.dimension_semantics<parallel>, #tpu.dimension_semantics<parallel>, #tpu.dimension_semantics<arbitrary>], iteration_bounds = array<i64: 2, 1, 1>, scalar_prefetch = 0 : i64, scratch_operands = 1 : i64, tpu.core_type = #tpu.core_type<tc>, window_params = [{transform_indices = @transform_0, window_bounds = array<i64: 1, 8, 32>}, {pipeline_mode = #tpu.pipeline_mode<synchronous>, transform_indices = @transform_1, window_bounds = array<i64: 32, 32>}, {transform_indices = @transform_2, window_bounds = array<i64: 1, 128, 32>}, {transform_indices = @transform_3, window_bounds = array<i64: 1, 8, 128>}]} {
    %c0_i32 = arith.constant 0 : i32
    %0 = arith.cmpi eq, %arg2, %c0_i32 : i32
    %1 = arith.extui %0 : i1 to i32
    %c0_i32_0 = arith.constant 0 : i32
    %2 = arith.cmpi ne, %1, %c0_i32_0 : i32
    scf.if %2 {
      %c0_8 = arith.constant 0 : index
      %c0_9 = arith.constant 0 : index
      %c0_10 = arith.constant 0 : index
      %10 = vector.load %arg3[%c0_8, %c0_9, %c0_10] : memref<1x8x32xbf16, #tpu.memory_space<vmem>>, vector<1x8x32xbf16>
      %11 = vector.shape_cast %10 : vector<1x8x32xbf16> to vector<8x32xbf16>
      %c0_11 = arith.constant 0 : index
      %c0_12 = arith.constant 0 : index
      %12 = vector.load %arg4[%c0_11, %c0_12] : memref<32x32xbf16, #tpu.memory_space<vmem>>, vector<32x32xbf16>
      %cst_13 = arith.constant dense<0.000000e+00> : vector<8x32xf32>
      %13 = tpu.matmul %11, %12, %cst_13 {dimension_numbers = #tpu.dot_dimension_numbers<[1], [0], [0], [1], [0, 0, 1, 1], [], []>} : vector<8x32xbf16>, vector<32x32xbf16>, vector<8x32xf32> -> vector<8x32xf32>
      %14 = arith.truncf %13 : vector<8x32xf32> to vector<8x32xbf16>
      %c0_14 = arith.constant 0 : index
      %c0_15 = arith.constant 0 : index
      %15 = vector.load %arg7[%c0_14, %c0_15] : memref<8x32xbf16, #tpu.memory_space<vmem>>, vector<8x32xbf16>
      tpu.vector_store %arg7[%c0_14, %c0_15], %14 {strides = array<i32>} : memref<8x32xbf16, #tpu.memory_space<vmem>>, vector<8x32xbf16>,
    } else {
    }
    %c0 = arith.constant 0 : index
    %c0_1 = arith.constant 0 : index
    %3 = vector.load %arg7[%c0, %c0_1] : memref<8x32xbf16, #tpu.memory_space<vmem>>, vector<8x32xbf16>
    %c0_2 = arith.constant 0 : index
    %c0_3 = arith.constant 0 : index
    %c0_4 = arith.constant 0 : index
    %4 = vector.load %arg5[%c0_2, %c0_3, %c0_4] : memref<1x128x32xbf16, #tpu.memory_space<vmem>>, vector<1x128x32xbf16>
    %5 = vector.shape_cast %4 : vector<1x128x32xbf16> to vector<128x32xbf16>
    %cst = arith.constant dense<0.000000e+00> : vector<8x128xf32>
    %6 = tpu.matmul %3, %5, %cst {dimension_numbers = #tpu.dot_dimension_numbers<[1], [1], [0], [0], [0, 0, 1, 0], [], []>} : vector<8x32xbf16>, vector<128x32xbf16>, vector<8x128xf32> -> vector<8x128xf32>
    %c0_5 = arith.constant 0 : index
    %c0_6 = arith.constant 0 : index
    %c0_7 = arith.constant 0 : index
    %7 = vector.load %arg6[%c0_5, %c0_6, %c0_7] : memref<1x8x128xf32, #tpu.memory_space<vmem>>, vector<1x8x128xf32>
    %8 = vector.shape_cast %7 : vector<1x8x128xf32> to vector<8x128xf32>
    %9 = vector.shape_cast %6 : vector<8x128xf32> to vector<1x8x128xf32>
    tpu.vector_store %arg6[%c0_5, %c0_6, %c0_7], %9 {strides = array<i32>} : memref<1x8x128xf32, #tpu.memory_space<vmem>>, vector<1x8x128xf32>,
    return
  }
  func.func @transform_0(%arg0: i32, %arg1: i32, %arg2: i32) -> (i32, i32, i32) {
    %c0_i32 = arith.constant 0 : i32
    %c0_i32_0 = arith.constant 0 : i32
    return %arg0, %arg1, %c0_i32 : i32, i32, i32
  }
  func.func @transform_1(%arg0: i32, %arg1: i32, %arg2: i32) -> (i32, i32) {
    %c0_i32 = arith.constant 0 : i32
    %c0_i32_0 = arith.constant 0 : i32
    %c0_i32_1 = arith.constant 0 : i32
    return %c0_i32, %c0_i32_0 : i32, i32
  }
  func.func @transform_2(%arg0: i32, %arg1: i32, %arg2: i32) -> (i32, i32, i32) {
    %c0_i32 = arith.constant 0 : i32
    %c0_i32_0 = arith.constant 0 : i32
    return %arg0, %arg2, %c0_i32 : i32, i32, i32
  }
  func.func @transform_3(%arg0: i32, %arg1: i32, %arg2: i32) -> (i32, i32, i32) {
    %c0_i32 = arith.constant 0 : i32
    return %arg0, %arg1, %arg2 : i32, i32, i32
  }
}

</mosaic_0001>

<bundles_post_ra>
// kernel: tpu_custom_call.1
= control target key start
LH: loop header
LB: loop body
LE: loop exit
PB: predicated region body
PF: predicated region fallthrough
CT: control target
= control target key end

     0   :  { %8 = vsyncpa [#allocation4], 0  ;;  %s1209_s0 = inlined_call_operand.hbm [shape: bf16[2,8,32], index: 0, kind: input, shape index: {}]   ;;  %s1210_s1 = inlined_call_operand.hbm [shape: bf16[32,32], index: 1, kind: input, shape index: {}]   ;;  %s1211_s2 = inlined_call_operand.hbm [shape: bf16[2,8,32], index: 2, kind: input, shape index: {}]   ;;  %s1212_s3 = inlined_call_operand.hbm [shape: f32[2,8,128], index: 3, kind: output, shape index: {}]  }
   0x1   :  { %10 = vsyncpa [#allocation4 + $0x1], 0 }
   0x2   :  { %11 = vsyncpa [#allocation7], 0 }
   0x3   :  { %12 = vsyncpa [#allocation5], 0 }
   0x4   :  { %14 = vsyncpa [#allocation5 + $0x1], 0  ;;  %s958_s12 = smov 0   ;;  %s960_s13 = smov 0  }
   0x5   :  { %s962_s14 = smov 0   ;;  %s964_s15 = smov 0  }
   0x6   :  { %s966_s16 = smov 0   ;;  %s968_s17 = smov 0  }
   0x7 LB: > { %s989_s18 = sadd.s32 4294967295, %s926_s17   ;;  %s602_s19 = sadd.s32 4294967294, %s926_s17   ;;  %s926_s17 = sphi %s968_s17, %s20_s17   ;;  %s922_s16 = sphi %s966_s16, %s1239_s16   ;;  %s918_s15 = sphi %s964_s15, %s1238_s15   ;;  %s914_s14 = sphi %s962_s14, %s1237_s14   ;;  %s910_s13 = sphi %s960_s13, %s1236_s13   ;;  %s906_s12 = sphi %s958_s12, %s1235_s12  }
   0x8   : > { %s39_s20 = sadd.s32 1, %s922_s16  ;;  %s48_s21 = sadd.s32 1, %s914_s14 }
   0x9   : > { %p41_p0 = scmp.ge.s32.totalorder %s39_s20, 2  ;;  %p55_p1 = scmp.ne.s32.totalorder %s914_s14, %s910_s13 }
   0xa   : > { %p56_p2 = scmp.eq.s32.totalorder %s926_s17, 0  ;;  %p61_p3 = scmp.ne.s32.totalorder %s910_s13, %s906_s12 }
   0xb   : > { %s1241_s20 = smov (%p41_p0, %s39_s20), 0  ;;  %p1213_p5 = scmp.eq.s32.totalorder %s989_s18, 0 }
   0xc   : > { %p1001_p4 = por %p56_p2, %p55_p1  ;;  %s43_s23 = ssub.s32 %s922_s16, %s1241_s20 }
   0xd   : > { %p138_p6 = scmp.eq.s32.totalorder %s989_s18, 1  ;;  %p46_p7 = scmp.eq.s32.totalorder %s43_s23, 0 }
   0xe   : > { %s1220_s22 = scalar_select %p1001_p4, 1, 0 }
   0xf   : > { %p1011_p8 = por %p1213_p5, %p61_p3  ;;  %p1015_p9 = por %p138_p6, %p55_p1 }
  0x10   : > { %p144_p10 = scmp.eq.s32.totalorder %s602_s19, 1  ;;  %p603_p12 = scmp.ge.s32.totalorder %s926_s17, 1 }
  0x11   : > { %s1221_s24 = scalar_select %p1011_p8, 1, 0 }
  0x12   : > { %s1222_s25 = scalar_select %p1015_p9, 1, 0 }
  0x13   : > { %s1020_s26 = scalar_select %p46_p7, %s914_s14, %s48_s21  }
  0x14   : > { %p1022_p11 = por %p144_p10, %p61_p3  ;;  %p151_p13 = scmp.lt.s32.totalorder %s926_s17, 3 }
  0x15   : > { %s928_s29 = smov [#allocation6]   ;;  %s756_s7 = scalar_lea.hbm %s1210_s1, 256 }
  0x16   : > { %s1223_s27 = scalar_select %p1022_p11, 1, 0 }
  0x17   : > { %p1028_p0 = pnand %p603_p12, %p151_p13  ;;  %s163_s30 = sshll.u32 %s928_s29, 4  ;;  %s164_s30 = int_to_ptr.vmem [resolvable:$true] %s163_s30 }
  0x18   : > { %p757_p3 = scmp.ne.s32.totalorder %s1210_s1, %s756_s7  ;;  %p763_p12 = scmp.lt.u32.totalorder %s756_s7, %s1210_s1 }
  0x19   : > { %s1224_s28 = scalar_select %p1028_p0, 1, 0 }
  0x1a   : > { %p680_p1 = pneg %p1028_p0 }
  0x1c   : > { %p1036_p2 = pnand %p680_p1, %p1213_p5 }
  0x1e   : > { %p758_p6 = pneg %p1036_p2 }
  0x20   : > { %p759_p7 = pnand %p758_p6, %p757_p3 }
  0x22   : > { %p760_p10 = pneg %p759_p7 }
  0x24   : > { %p765_p13 = pnand %p763_p12, %p760_p10 }
  0x26   : > { %768 = shalt.err (!%p765_p13)
}
  0x27   : > { %s769_s19 = scalar_lea.vmem %s164_s30, 256  ;;  %p777_p9 = scmp.lt.s32.totalorder %s164_s30, %s164_s30 }
  0x28   : > { %p770_p1 = scmp.ne.s32.totalorder %s164_s30, %s769_s19  ;;  %p778_p8 = scmp.lt.s32.totalorder %s769_s19, %s769_s19 }
  0x2a   : > { %p772_p5 = pnand %p770_p1, %p758_p6  ;;  %p779_p0 = por %p778_p8, %p777_p9 }
  0x2c   : > { %p773_p11 = pneg %p772_p5 }
  0x2e   : > { %p780_p4 = pnand %p779_p0, %p773_p11 }
  0x30   : > { %783 = shalt.err (!%p780_p4)
}
  0x31   : > { %s929_s21 = smov 64   ;;  %s930_s23 = smov 4  }
  0x32   : > { %683 = dma.hbm_to_vmem [thread:$0]  (!%p1036_p2), %s1210_s1, 256, %s164_s30, [#allocation7], %s929_s21, %s929_s21, %s930_s23  }
  0x33   : > { %p1219_p3 = scmp.ge.s32.totalorder %s926_s17, 2 }
  0x34   : > { %s177_s6 = sand.u32 (!%p1219_p3), 1, %s926_s17   ;;  %s179_s7 = sand.u32 (!%p1219_p3), 1, %s914_s14  }
  0x35   : > { %173 = sbr.rel (%p1219_p3) target bundleno = 110 (0x6e), region = 20  ;;  %s606_s8 = sshll.u32 (!%p1219_p3), %s179_s7, 2 }
  0x36   : > { %s1218_s4 = sshll.u32 (!%p1219_p3), %s922_s16, 6  ;;  %s181_s11 = scalar_lea.vmem (!%p1219_p3), [#allocation3], %s606_s8 }
  0x37   : > { %s1069_s30 = scalar_lea.hbm (!%p1219_p3), %s1209_s0, %s1218_s4  ;;  %s189_s19 = sshll.u32 (!%p1219_p3), %s181_s11, 4  ;;  %s190_s19 = int_to_ptr.vmem [resolvable:$true] %s189_s19 }
  0x38   : > { %s1071_s21 = scalar_lea.sflag (!%p1219_p3), [#allocation4], %s177_s6  ;;  %s784_s23 = scalar_lea.hbm (!%p1219_p3), %s1069_s30, 64 }
  0x39   : > { %p785_p4 = scmp.ne.s32.totalorder (!%p1219_p3), %s1069_s30, %s784_s23  ;;  %p1226_p5 = scmp.ne.s32.totalorder (!%p1219_p3), %s1220_s22, 0 }
  0x3a   : > { %s788_s9 = scalar_lea.hbm (!%p1219_p3), %s1209_s0, 128  ;;  %p789_p11 = scmp.lt.u32.totalorder (!%p1219_p3), %s1069_s30, %s1209_s0 }
  0x3b   : > { %p786_p8 = pnand (!%p1219_p3), %p785_p4, %p1226_p5  ;;  %p790_p0 = scmp.lt.u32.totalorder (!%p1219_p3), %s788_s9, %s784_s23 }
  0x3c   : > { %p792_p6 = scmp.lt.u32.totalorder %s784_s23, %s1069_s30 }
  0x3d   : > { %p787_p9 = pneg %p786_p8  ;;  %p791_p2 = por %p790_p0, %p789_p11 }
  0x3f   : > { %p793_p7 = por %p792_p6, %p791_p2 }
  0x41   : > { %p794_p10 = pnand %p793_p7, %p787_p9 }
  0x43   : > { %797 = shalt.err (!%p794_p10)
}
  0x44   : > { %s798_s6 = scalar_lea.vmem %s190_s19, 64  ;;  %s931_s8 = smov [#allocation3]  }
  0x45   : > { %p799_p12 = scmp.ne.s32.totalorder %s190_s19, %s798_s6  ;;  %s802_s11 = sshll.u32 %s931_s8, 4  ;;  %s803_s11 = int_to_ptr.vmem [resolvable:$false] %s802_s11 }
  0x46   : > { %s804_s29 = scalar_lea.vmem %s803_s11, 128  ;;  %p805_p4 = scmp.lt.s32.totalorder %s190_s19, %s803_s11 }
  0x47   : > { %p800_p13 = pnand %p799_p12, %p1226_p5  ;;  %p806_p8 = scmp.lt.s32.totalorder %s804_s29, %s798_s6 }
  0x49   : > { %p801_p1 = pneg %p800_p13  ;;  %p807_p3 = por %p806_p8, %p805_p4 }
  0x4b   : > { %p808_p0 = pnand %p807_p3, %p801_p1 }
  0x4d   : > { %811 = shalt.err (!%p808_p0)
}
  0x4e   : > { %673 = dma.hbm_to_vmem [thread:$0]  (%p1226_p5), %s1069_s30, 64, %s190_s19, %s1071_s21  }
  0x4f   : > { %195 = sbr.rel (!%p1226_p5) target bundleno = 110 (0x6e), region = 28  ;;  %s608_s4 = sshll.u32 (%p1226_p5), %s179_s7, 6 }
  0x50   : > { %s200_s23 = scalar_lea.vmem (%p1226_p5), [#allocation8], %s608_s4 }
  0x56   : > { %206 = vsyncadd %s1071_s21, 960  ;;  %s1227_s5 = sshll.u32 %s922_s16, 6  ;;  %s212_s30 = sshll.u32 %s200_s23, 4  ;;  %s213_s30 = int_to_ptr.vmem [resolvable:$true] %s212_s30 }
  0x57   : > { %s1101_s6 = scalar_lea.hbm %s1211_s2, %s1227_s5  ;;  %s814_s7 = scalar_lea.hbm %s1211_s2, 128 }
  0x58   : > { %s812_s22 = scalar_lea.hbm %s1101_s6, 64  ;;  %p815_p5 = scmp.lt.u32.totalorder %s1101_s6, %s1211_s2 }
  0x59   : > { %p813_p3 = scmp.ne.s32.totalorder %s1101_s6, %s812_s22  ;;  %p816_p9 = scmp.lt.u32.totalorder %s814_s7, %s812_s22 }
  0x5a   : > { %p818_p2 = scmp.lt.u32.totalorder %s812_s22, %s1101_s6 }
  0x5b   : > { %p817_p11 = por %p816_p9, %p815_p5 }
  0x5d   : > { %p819_p6 = por %p818_p2, %p817_p11 }
  0x5f   : > { %p820_p7 = pnand %p819_p6, %p813_p3 }
  0x61   : > { %823 = shalt.err (!%p820_p7)
}
  0x62   : > { %s824_s4 = scalar_lea.vmem %s213_s30, 64  ;;  %s932_s23 = smov [#allocation8]  }
  0x63   : > { %p825_p10 = scmp.ne.s32.totalorder %s213_s30, %s824_s4  ;;  %s826_s5 = sshll.u32 %s932_s23, 4  ;;  %s827_s5 = int_to_ptr.vmem [resolvable:$false] %s826_s5 }
  0x64   : > { %s828_s9 = scalar_lea.vmem %s827_s5, 2048  ;;  %p829_p12 = scmp.lt.s32.totalorder %s213_s30, %s827_s5 }
  0x65   : > { %p830_p13 = scmp.lt.s32.totalorder %s828_s9, %s824_s4 }
  0x67   : > { %p831_p1 = por %p830_p13, %p829_p12 }
  0x69   : > { %p832_p4 = pnand %p831_p1, %p825_p10 }
  0x6b   : > { %835 = shalt.err (!%p832_p4)
}
  0x6c   : > { %s933_s10 = smov 64   ;;  %s934_s19 = smov 4  }
  0x6d   : > { %218 = dma.hbm_to_vmem [thread:$0]  %s1101_s6, 64, %s213_s30, %s1071_s21, %s933_s10, %s933_s10, %s934_s19  }
  0x6e PF: > { %p1228_p8 = scmp.ne.s32.totalorder %s1224_s28, 0 }
  0x6f   : > { %s226_s22 = sand.u32 (!%p1228_p8), 1, %s989_s18   ;;  %s1119_s8 = sand.u32 (!%p1228_p8), 1, %s910_s13  }
  0x70   : > { %224 = sbr.rel (%p1228_p8) target bundleno = 585 (0x249), region = 32  ;;  %s611_s7 = sshll.u32 (!%p1228_p8), %s1119_s8, 2 }
  0x71   : > { %s227_s11 = scalar_lea.sflag (!%p1228_p8), [#allocation4], %s226_s22  ;;  %s230_s29 = scalar_lea.vmem (!%p1228_p8), [#allocation3], %s611_s7 }
  0x72   : > { %p1229_p0 = scmp.ne.s32.totalorder (!%p1228_p8), %s1221_s24, 0 }
  0x77   : > { %889 = dma.done.wait (%p1229_p0), %s227_s11, 64  }
  0x78   : > { %891 = vsyncadd (%p1229_p0), %s227_s11, 4294967232  ;;  %p1230_p3 = scmp.eq.s32.totalorder %s989_s18, 0 }
  0x7a   : > { %893 = dma.done.wait (%p1230_p3), [#allocation7], 256   ;;  %p1231_p5 = pmov %p1230_p3 }
  0x7b   : > { %s613_s28 = sshll.u32 %s1119_s8, 6 }
  0x7c   : > { %895 = vsyncadd (%p1231_p5), [#allocation7], 4294967040  ;;  %s1131_s21 = scalar_lea.vmem [#allocation8], %s613_s28 }
  0x7d   : > { %897 = dma.done.wait (%p1229_p0), %s227_s11, 1024  }
  0x7e   : > { %899 = vsyncadd (%p1229_p0), %s227_s11, 4294966272  ;;  %v935_v0 = vmov 0.0   ;;  %vm936_vm0 = vmmov 0   ;;  %v746_v1 = vld [vmem:[#allocation6] sm:$0xff]   ;;  %v747_v2 = vld [vmem:[#allocation6 + $0x8] sm:$0xff]   ;;  %vm296_vm1 = vcmask 261120  }
  0x7f   : > { %643 = vmatprep.subr.bf16.mxu0 %v935_v0  ;;  %647 = vmatprep.mubr.msk.bf16.mxu0 %vm936_vm0, %v935_v0  ;;  %v748_v3 = vld [vmem:[%s1131_s21] sm:$0xff]   ;;  %v279_v5 = vld [vmem:[%s230_s29] sm:$0xf]  ;;  %v750_v8 = vld [vmem:[%s1131_s21 + $0x10] sm:$0xff]   ;;  %vm341_vm2 = vcmask 257024   ;;  %s614_s18 = sshll.u32 %s1119_s8, 3 }
  0x80   : > { %651 = vmatprep.subr.bf16.mxu1 %v935_v0  ;;  %667 = vmatprep.mubr.msk.bf16.mxu1 %vm936_vm0, %v935_v0  ;;  %v405_v4 = vsel %vm296_vm1, %v748_v3, 0  ;;  %v749_v6 = vld [vmem:[%s1131_s21 + $0x8] sm:$0xff]   ;;  %v411_v9 = vsel %vm296_vm1, %v750_v8, 0  ;;  %v751_v10 = vld [vmem:[%s1131_s21 + $0x18] sm:$0xff]   ;;  %v752_v12 = vld [vmem:[%s1131_s21 + $0x20] sm:$0xff]   ;;  %s270_s24 = scalar_lea.vmem [#allocation9], %s614_s18 }
  0x81   : > { %644 = vmatpush3.bf16.msra.mxu0 %v746_v1  ;;  %652 = vmatpush3.bf16.xpose.msra.mxu1 %v405_v4  ;;  %v408_v7 = vsel %vm296_vm1, %v749_v6, 0  ;;  %v414_v11 = vsel %vm296_vm1, %v751_v10, 0  ;;  %v417_v13 = vsel %vm296_vm1, %v752_v12, 0  ;;  %v753_v14 = vld [vmem:[%s1131_s21 + $0x28] sm:$0xff]   ;;  %v754_v16 = vld [vmem:[%s1131_s21 + $0x30] sm:$0xff]   ;;  %v755_v18 = vld [vmem:[%s1131_s21 + $0x38] sm:$0xff]  }
  0x82   : > { %645 = vmatprep.subr.bf16.mxu0 %v935_v0  ;;  %653 = vmatprep.subr.bf16.mxu1 %v935_v0  ;;  %v420_v15 = vsel %vm296_vm1, %v753_v14, 0  ;;  %v423_v17 = vsel %vm296_vm1, %v754_v16, 0  ;;  %v426_v19 = vsel %vm296_vm1, %v755_v18, 0  ;;  %s485_s6 = sshll.u32 %s270_s24, 4  ;;  %s628_s30 = sshll.u32 %s918_s15, 7  ;;  %s1157_s6 = int_to_ptr.vmem [resolvable:$true] %s485_s6 }
  0x83   : > { %s1162_s5 = scalar_lea.hbm %s1212_s3, %s628_s30  ;;  %s470_s9 = scalar_lea.sflag [#allocation5], %s1119_s8 }
  0x84   : > { %s836_s10 = scalar_lea.vmem %s1157_s6, 128  ;;  %p1232_p11 = scmp.ne.s32.totalorder %s1222_s25, 0 }
  0x85   : > { %646 = vmatpush3.bf16.msra.mxu0 %v747_v2  ;;  %p837_p9 = scmp.ne.s32.totalorder %s1157_s6, %s836_s10  ;;  %s937_s15 = smov [#allocation9]  }
  0x86   : > { %s840_s19 = sshll.u32 %s937_s15, 4  ;;  %s841_s19 = int_to_ptr.vmem [resolvable:$false] %s840_s19 }
  0x87   : > { %p838_p2 = pnand %p837_p9, %p1232_p11  ;;  %s842_s22 = scalar_lea.vmem %s841_s19, 256 }
  0x88   : > { %648 = vmatmul.mubr.msk.bf16.vlgmr.msra.gmra.mrb[0].mxu0 %vm296_vm1, %v279_v5  ;;  %p843_p7 = scmp.lt.s32.totalorder %s1157_s6, %s841_s19  ;;  %p844_p10 = scmp.lt.s32.totalorder %s842_s22, %s836_s10 }
  0x89   : > { %654 = vmatpush3.bf16.xpose.msra.mxu1 %v408_v7  ;;  %p839_p6 = pneg %p838_p2 }
  0x8a   : > { %655 = vmatprep.subr.bf16.mxu1 %v935_v0  ;;  %p845_p12 = por %p844_p10, %p843_p7 }
  0x8c   : > { %p846_p13 = pnand %p845_p12, %p839_p6 }
  0x91   : > { %656 = vmatpush3.bf16.xpose.msra.mxu1 %v411_v9 }
  0x92   : > { %657 = vmatprep.subr.bf16.mxu1 %v935_v0 }
  0x99   : > { %658 = vmatpush3.bf16.xpose.msra.mxu1 %v414_v11 }
  0x9a   : > { %659 = vmatprep.subr.bf16.mxu1 %v935_v0 }
  0xa1   : > { %660 = vmatpush3.bf16.xpose.msra.mxu1 %v417_v13 }
  0xa2   : > { %661 = vmatprep.subr.bf16.mxu1 %v935_v0 }
  0xa9   : > { %662 = vmatpush3.bf16.xpose.msra.mxu1 %v420_v15 }
  0xaa   : > { %663 = vmatprep.subr.bf16.mxu1 %v935_v0 }
  0xb1   : > { %664 = vmatpush3.bf16.xpose.msra.mxu1 %v423_v17 }
  0xb2   : > { %665 = vmatprep.subr.bf16.mxu1 %v935_v0 }
  0xb9   : > { %666 = vmatpush3.bf16.xpose.msra.mxu1 %v426_v19 }
 0x15b   : > { %v334_v20 = vpop.f32.mrb[0].mxu0 }
 0x15c   : > { %v340_v21 = vpack.c.bf16 %v334_v20, %v334_v20  ;;  %v649_v22 = vpop.f32.mrb[1].mxu0 }
 0x15d   : > { %v337_v23 = vpop.f32.mrb[2].mxu0 }
 0x15e   : > { %342 = vst.msk [vmem:[#allocation2] sm:$0xf] %vm341_vm2, %v340_v21  ;;  %v650_v24 = vpop.f32.mrb[3].mxu0 }
 0x165   : > { %v343_v25 = vld [vmem:[#allocation2] sm:$0xf] }
 0x166   : > { %668 = vmatmul.mubr.msk.bf16.vlgmr.msra.gmra.mrb[0].mxu1 %vm296_vm1, %v343_v25 }
 0x239   : > { %v462_v26 = vpop.f32.mrb[0].mxu1 }
 0x23a   : > { %468 = vst [vmem:[%s270_s24] sm:$0xff] %v462_v26  ;;  %v669_v27 = vpop.f32.mrb[1].mxu1 }
 0x23b   : > { %v465_v28 = vpop.f32.mrb[2].mxu1 }
 0x23c   : > { %849 = shalt.err (!%p846_p13)
}
 0x23d   : > { %s850_s8 = scalar_lea.hbm %s1162_s5, 128  ;;  %s854_s29 = scalar_lea.hbm %s1212_s3, 256 }
 0x23e   : > { %p851_p1 = scmp.ne.s32.totalorder %s1162_s5, %s850_s8  ;;  %p855_p0 = scmp.lt.u32.totalorder %s1162_s5, %s1212_s3 }
 0x23f   : > { %p856_p3 = scmp.lt.u32.totalorder %s854_s29, %s850_s8  ;;  %p858_p9 = scmp.lt.u32.totalorder %s850_s8, %s1162_s5 }
 0x240   : > { %p852_p4 = pnand %p851_p1, %p1232_p11 }
 0x241   : > { %p857_p5 = por %p856_p3, %p855_p0 }
 0x242   : > { %p853_p8 = pneg %p852_p4 }
 0x243   : > { %p859_p2 = por %p858_p9, %p857_p5 }
 0x245   : > { %p860_p6 = pnand %p859_p2, %p853_p8 }
 0x247   : > { %863 = shalt.err (!%p860_p6)
}
 0x248   : > { %678 = dma.vmem_to_hbm [thread:$0]  (%p1232_p11), %s1157_s6, 128, %s1162_s5, %s470_s9   ;;  %v670_v29 = vpop.f32.mrb[3].mxu1 }
 0x249 PF: > { %s497_s18 = sand.u32 1, %s906_s12   ;;  %p1233_p7 = scmp.ne.s32.totalorder %s1223_s27, 0 }
 0x24a   : > { %p1234_p10 = scmp.ge.s32.totalorder %s926_s17, 2  ;;  %s498_s24 = scalar_lea.sflag [#allocation5], %s497_s18 }
 0x24c   : > { %p685_p12 = pnand %p1234_p10, %p1233_p7 }
 0x24e   : > { %901 = dma.done.wait (!%p685_p12), %s498_s24, 128  }
 0x24f   : > { %903 = vsyncadd (!%p685_p12), %s498_s24, 4294967168  ;;  %s20_s17 = sadd.s32 1, %s926_s17   ;;  %s1235_s12 = smov %s910_s13 }
 0x250   : > { %p17_p13 = scmp.ge.s32.totalorder %s20_s17, 4   ;;  %s1236_s13 = smov %s914_s14 }
 0x251   : > { %s1237_s14 = smov %s1020_s26  ;;  %s1238_s15 = smov %s922_s16 }
 0x252   : > { %s1239_s16 = smov %s1241_s20  ;;  %19 = sbr.rel (!%p17_p13) target bundleno = 7 (0x7), region = 96 }
 0x259   :  { %503 = vsyncpa [#allocation4], 1 }
 0x25a   :  { %505 = vsyncpa [#allocation4 + $0x1], 1 }
 0x25b   :  { %506 = vsyncpa [#allocation7], 1 }
 0x25c   :  { %507 = vsyncpa [#allocation5], 1 }
 0x25d   :  { %509 = vsyncpa [#allocation5 + $0x1], 1 }

</bundles_post_ra>
